<compile_context>
chip_gen: v6e
topology: v6e:2x2x1
jax: 0.10.0
libtpu: 0.0.40
codegen_flags: <defaults>
</compile_context>

<pallas_src>
import math

import jax
import jax.numpy as jnp
from jax.experimental import pallas as pl
from jax.experimental.pallas import tpu as pltpu


# --------------------------------------------------------------------------------------
# Parameter setup (torch __init__ equivalent)
# --------------------------------------------------------------------------------------
def make_positional_encoding(d_model: int, max_len: int = 5000,
                             dtype=jnp.float32) -> jnp.ndarray:
    """Build the (max_len, d_model) sinusoidal table exactly like the torch __init__.

    Build it in the model dtype so the forward path never has to cast it.
    """
    assert d_model % 2 == 0, "d_model must be even (same restriction as the torch module)"
    position = jnp.arange(0, max_len, dtype=jnp.float32)[:, None]              # (max_len, 1)
    div_term = jnp.exp(
        jnp.arange(0, d_model, 2, dtype=jnp.float32) * (-math.log(10000.0) / d_model)
    )                                                                           # (d_model//2,)
    angles = position * div_term                                                # (max_len, d//2)
    # Interleave: even columns = sin, odd columns = cos.
    pe = jnp.stack([jnp.sin(angles), jnp.cos(angles)], axis=-1).reshape(max_len, d_model)
    return pe.astype(dtype)


# --------------------------------------------------------------------------------------
# Kernel
# --------------------------------------------------------------------------------------
def _pe_add_kernel(x_ref, pe_ref, o_ref):
    # x_ref: (ts, tn, E) tile; pe_ref: (ts, E) tile -> broadcast over the batch dim.
    # The op is HBM-bandwidth bound; the sublane broadcast is hidden under the DMA.
    o_ref[...] = x_ref[...] + pe_ref[...][:, None, :]


# --------------------------------------------------------------------------------------
# Tiling helpers
# --------------------------------------------------------------------------------------
def _round_up(v: int, m: int) -> int:
    return (v + m - 1) // m * m


def _round_down(v: int, m: int) -> int:
    return (v // m) * m


def _vmem_limit_clamp_bytes() -> int:
    """Chip-aware vmem_limit clamp: ~64 MiB on 128-MiB-VMEM parts, ~48 MiB on v7x."""
    try:
        info = pltpu.get_tpu_info()
        cap = int(getattr(info, "vmem_capacity_bytes", 64 << 20))
    except Exception:  # pragma: no cover - conservative fallback off-TPU / old jax
        cap = 64 << 20
    return (64 << 20) if cap >= (100 << 20) else (48 << 20)


def _choose_tiles(S: int, N: int, E: int, itemsize: int,
                  target_bytes: int) -> tuple[int, int]:
    """Pick (ts, tn): seq/batch rows per grid step.

    * ts is a multiple of 8 (pe block sublane dim), <= floor(S/8)*8.
    * tn is either the full batch N, or a multiple of the sublane granule
      (8 for f32, 16 for bf16, 32 for 8-bit) so the (tn, E) trailing dims of the
      x block stay layout-legal.
    * Each x block targets ~`target_bytes` so the per-grid-step fixed cost
      (~0.35 us) is amortized and the DMA stays near HBM roofline on all chips.
    """
    granule = max(8, 32 // max(itemsize, 1))          # sublane granule for x's batch dim
    row_bytes = N * E * itemsize                       # one full-batch seq row

    if row_bytes <= target_bytes or N <= granule:
        # Full batch per block; grow along seq.
        tn = N
        ts = _round_down(max(target_bytes // max(row_bytes, 1), 1), 8)
        ts = max(8, min(ts, _round_down(S, 8)))
    else:
        # Large N*E: tile the batch so each block stays in the sweet spot.
        ts = 8
        tn = _round_down(target_bytes // max(ts * E * itemsize, 1), granule)
        tn = max(granule, min(tn, _round_down(N, granule)))
    return int(ts), int(tn)


# --------------------------------------------------------------------------------------
# Forward (torch forward equivalent)
# --------------------------------------------------------------------------------------
def positional_encoding_forward(x: jnp.ndarray, pe_table: jnp.ndarray,
                                _target_block_bytes: int = 6 << 20) -> jnp.ndarray:
    """x: (S, N, E). Returns x + pe_table[:S] broadcast over the batch dimension."""
    S, N, E = x.shape
    max_len, Et = pe_table.shape
    assert Et == E, "pe table feature dim must match x"
    assert S <= max_len, "sequence longer than the positional-encoding table"

    # Table should already be in the model dtype (built that way at setup);
    # keep the cast only as a correctness fallback.
    pe = pe_table if pe_table.dtype == x.dtype else pe_table.astype(x.dtype)

    if S < 8:
        # Tiny-sequence fallback: a fused XLA add beats launching a kernel for a few KiB.
        return x + pe[:S][:, None, :]

    itemsize = jnp.dtype(x.dtype).itemsize
    ts, tn = _choose_tiles(S, N, E, itemsize, _target_block_bytes)
    grid = (pl.cdiv(S, ts), pl.cdiv(N, tn))   # cdiv + Pallas masking handles ragged S / N

    # VMEM budget: double-buffered x-in, out and pe blocks (+ headroom), clamped per chip.
    x_blk = ts * _round_up(tn, 8) * _round_up(E, 128) * itemsize
    pe_blk = _round_up(ts, 8) * _round_up(E, 128) * itemsize
    vmem_needed = 2 * (2 * x_blk + pe_blk) + (1 << 20)
    vmem_limit = int(min(max(vmem_needed, 16 << 20), _vmem_limit_clamp_bytes()))

    cost = pl.CostEstimate(
        flops=S * N * E,
        transcendentals=0,
        bytes_accessed=2 * S * N * E * itemsize + S * E * itemsize,
    )

    return pl.pallas_call(
        _pe_add_kernel,
        out_shape=jax.ShapeDtypeStruct((S, N, E), x.dtype),
        grid_spec=pltpu.PrefetchScalarGridSpec(
            num_scalar_prefetch=0,
            grid=grid,
            in_specs=[
                pl.BlockSpec((ts, tn, E), lambda i, j: (i, j, 0)),
                # pe rows come straight out of the full (max_len, E) table.
                pl.BlockSpec((ts, E), lambda i, j: (i, 0)),
            ],
            out_specs=pl.BlockSpec((ts, tn, E), lambda i, j: (i, j, 0)),
        ),
        compiler_params=pltpu.CompilerParams(
            dimension_semantics=("parallel", "parallel"),
            vmem_limit_bytes=vmem_limit,
        ),
        cost_estimate=cost,
    )(x, pe)


# --------------------------------------------------------------------------------------
# Self-test
# --------------------------------------------------------------------------------------
if __name__ == "__main__":
    key = jax.random.PRNGKey(0)
    k1, k2, k3, k4 = jax.random.split(key, 4)

    # Case 1: lane-dense output (E % 128 == 0), batch >= 8 (no sublane padding).
    S, N, E = 16, 8, 128
    x = jax.random.normal(k1, (S, N, E), dtype=jnp.float32)
    pe_table = make_positional_encoding(d_model=E, max_len=5000)
    ref = x + pe_table[:S][:, None, :]
    out = jax.block_until_ready(positional_encoding_forward(x, pe_table))
    assert out.shape == (S, N, E)
    assert jnp.allclose(out, ref, atol=1e-6, rtol=1e-6), "mismatch (primary case)"

    # Case 2: ragged seq (S not a multiple of the tile), small batch and d_model.
    S2, N2, E2 = 11, 2, 32
    x2 = jax.random.normal(k2, (S2, N2, E2), dtype=jnp.float32)
    pe_table2 = make_positional_encoding(d_model=E2, max_len=64)
    ref2 = x2 + pe_table2[:S2][:, None, :]
    out2 = jax.block_until_ready(positional_encoding_forward(x2, pe_table2))
    assert out2.shape == (S2, N2, E2)
    assert jnp.allclose(out2, ref2, atol=1e-6, rtol=1e-6), "mismatch (ragged case)"

    # Case 3: force the batch-tiling path (tiny block target -> grid over S and N).
    S3, N3, E3 = 16, 32, 128
    x3 = jax.random.normal(k3, (S3, N3, E3), dtype=jnp.float32)
    pe_table3 = make_positional_encoding(d_model=E3, max_len=128)
    ref3 = x3 + pe_table3[:S3][:, None, :]
    out3 = jax.block_until_ready(
        positional_encoding_forward(x3, pe_table3, _target_block_bytes=8 << 10))
    assert out3.shape == (S3, N3, E3)
    assert jnp.allclose(out3, ref3, atol=1e-6, rtol=1e-6), "mismatch (batch-tiled case)"

    # Case 4: tiny sequence (S < 8) -> plain fused XLA add fallback.
    S4, N4, E4 = 5, 4, 32
    x4 = jax.random.normal(k4, (S4, N4, E4), dtype=jnp.float32)
    pe_table4 = make_positional_encoding(d_model=E4, max_len=16)
    ref4 = x4 + pe_table4[:S4][:, None, :]
    out4 = jax.block_until_ready(positional_encoding_forward(x4, pe_table4))
    assert out4.shape == (S4, N4, E4)
    assert jnp.allclose(out4, ref4, atol=1e-6, rtol=1e-6), "mismatch (tiny-seq fallback)"

    print("KERNEL_OK")
</pallas_src>

<mosaic_0001>
module attributes {stable_mosaic.version = 11 : i64} {
  func.func @_pe_add_kernel(%arg0: i32, %arg1: i32, %arg2: memref<16x8x128xf32, #tpu.memory_space<vmem>>, %arg3: memref<16x128xf32, #tpu.memory_space<vmem>>, %arg4: memref<16x8x128xf32, #tpu.memory_space<vmem>>) attributes {dimension_semantics = [#tpu.dimension_semantics<parallel>, #tpu.dimension_semantics<parallel>], iteration_bounds = array<i64: 1, 1>, scalar_prefetch = 0 : i64, scratch_operands = 0 : i64, tpu.core_type = #tpu.core_type<tc>, window_params = [{transform_indices = @transform_0, window_bounds = array<i64: 16, 8, 128>}, {transform_indices = @transform_1, window_bounds = array<i64: 16, 128>}, {transform_indices = @transform_2, window_bounds = array<i64: 16, 8, 128>}]} {
    %c0 = arith.constant 0 : index
    %c0_0 = arith.constant 0 : index
    %c0_1 = arith.constant 0 : index
    %0 = vector.load %arg2[%c0, %c0_0, %c0_1] : memref<16x8x128xf32, #tpu.memory_space<vmem>>, vector<16x8x128xf32>
    %c0_2 = arith.constant 0 : index
    %c0_3 = arith.constant 0 : index
    %1 = vector.load %arg3[%c0_2, %c0_3] : memref<16x128xf32, #tpu.memory_space<vmem>>, vector<16x128xf32>
    %2 = vector.shape_cast %1 : vector<16x128xf32> to vector<16x1x128xf32>
    %3 = vector.broadcast %2 : vector<16x1x128xf32> to vector<16x8x128xf32>
    %4 = arith.addf %0, %3 : vector<16x8x128xf32>
    %c0_4 = arith.constant 0 : index
    %c0_5 = arith.constant 0 : index
    %c0_6 = arith.constant 0 : index
    %5 = vector.load %arg4[%c0_4, %c0_5, %c0_6] : memref<16x8x128xf32, #tpu.memory_space<vmem>>, vector<16x8x128xf32>
    tpu.vector_store %arg4[%c0_4, %c0_5, %c0_6], %4 {strides = array<i32>} : memref<16x8x128xf32, #tpu.memory_space<vmem>>, vector<16x8x128xf32>,
    return
  }
  func.func @transform_0(%arg0: i32, %arg1: i32) -> (i32, i32, i32) {
    %c0_i32 = arith.constant 0 : i32
    %c0_i32_0 = arith.constant 0 : i32
    return %arg0, %arg1, %c0_i32 : i32, i32, i32
  }
  func.func @transform_1(%arg0: i32, %arg1: i32) -> (i32, i32) {
    %c0_i32 = arith.constant 0 : i32
    %c0_i32_0 = arith.constant 0 : i32
    return %arg0, %c0_i32 : i32, i32
  }
  func.func @transform_2(%arg0: i32, %arg1: i32) -> (i32, i32, i32) {
    %c0_i32 = arith.constant 0 : i32
    %c0_i32_0 = arith.constant 0 : i32
    return %arg0, %arg1, %c0_i32 : i32, i32, i32
  }
}

</mosaic_0001>

<bundles_post_ra>
// kernel: tpu_custom_call.1
= control target key start
LH: loop header
LB: loop body
LE: loop exit
PB: predicated region body
PF: predicated region fallthrough
CT: control target
= control target key end

     0   :  { %7 = vsyncpa [#allocation3], 0  ;;  %s433_s0 = inlined_call_operand.hbm [shape: f32[16,8,128], index: 0, kind: input, shape index: {}]   ;;  %s434_s1 = inlined_call_operand.hbm [shape: f32[5000,128], index: 1, kind: input, shape index: {}]   ;;  %s435_s2 = inlined_call_operand.hbm [shape: f32[16,8,128], index: 2, kind: output, shape index: {}]  }
   0x1   :  { %8 = vsyncpa [#allocation6], 0 }
   0x2   :  { %9 = vsyncpa [#allocation4], 0  ;;  %s362_s9 = smov [#allocation2]  }
   0x3   :  { %s15_s10 = sshll.u32 %s362_s9, 4  ;;  %s16_s10 = int_to_ptr.vmem [resolvable:$true] %s15_s10 }
   0x4   :  { %s304_s11 = scalar_lea.vmem %s16_s10, 2048  ;;  %p309_p1 = scmp.lt.s32.totalorder %s16_s10, %s16_s10 }
   0x5   :  { %p305_p0 = scmp.ne.s32.totalorder %s16_s10, %s304_s11  ;;  %p310_p2 = scmp.lt.s32.totalorder %s304_s11, %s304_s11 }
   0x7   :  { %p311_p3 = por %p310_p2, %p309_p1 }
   0x9   :  { %p312_p4 = pnand %p311_p3, %p305_p0 }
   0xb   :  { %315 = shalt.err (!%p312_p4)
}
   0xc   :  { %s363_s12 = smov 128   ;;  %s364_s13 = smov 8  }
   0xd   :  { %21 = dma.hbm_to_vmem [thread:$0]  %s433_s0, 2048, %s16_s10, [#allocation3], %s363_s12, %s363_s12, %s364_s13  }
   0xe   :  { %s365_s16 = smov [#allocation5]  }
   0xf   :  { %s27_s17 = sshll.u32 %s365_s16, 4  ;;  %s28_s17 = int_to_ptr.vmem [resolvable:$true] %s27_s17 }
  0x10   :  { %s324_s18 = scalar_lea.vmem %s28_s17, 256  ;;  %p329_p6 = scmp.lt.s32.totalorder %s28_s17, %s28_s17 }
  0x11   :  { %p325_p5 = scmp.ne.s32.totalorder %s28_s17, %s324_s18  ;;  %p330_p7 = scmp.lt.s32.totalorder %s324_s18, %s324_s18 }
  0x13   :  { %p331_p8 = por %p330_p7, %p329_p6 }
  0x15   :  { %p332_p9 = pnand %p331_p8, %p325_p5 }
  0x17   :  { %335 = shalt.err (!%p332_p9)
}
  0x18   :  { %33 = dma.hbm_to_vmem [thread:$0]  %s434_s1, 256, %s28_s17, [#allocation6], %s363_s12, %s363_s12, %s364_s13  }
  0x19   :  { %356 = dma.done.wait [#allocation3], 2048  }
  0x1a   :  { %357 = vsyncadd [#allocation3], 4294965248 }
  0x1b   :  { %358 = dma.done.wait [#allocation6], 256  }
  0x1c   :  { %359 = vsyncadd [#allocation6], 4294967040  ;;  %v64_v0 = vlaneseq  ;;  %v366_v1 = vmov 1966171168   ;;  %v56_v6 = vld [vmem:[#allocation5] sm:$0xff]  ;;  %v57_v13 = vld [vmem:[#allocation5 + $0x8] sm:$0xff] }
  0x1d   :  { %v62_v2 = vunpack.c.l.s4 %v366_v1  ;;  %v60_v9 = vcombine.high %v56_v6, %v56_v6  ;;  %v40_v14 = vld [vmem:[#allocation2] sm:$0xff]  ;;  %v109_v16 = vcombine.high %v57_v13, %v57_v13  ;;  %v41_v21 = vld [vmem:[#allocation2 + $0x8] sm:$0xff]  ;;  %v42_v22 = vld [vmem:[#allocation2 + $0x10] sm:$0xff]  ;;  %s367_s0 = smov [#allocation7]  }
  0x1e   :  { %v65_v3 = vshrl.u32 %v64_v0, 7  ;;  %v44_v31 = vld [vmem:[#allocation2 + $0x20] sm:$0xff]  ;;  %v43_v32 = vld [vmem:[#allocation2 + $0x18] sm:$0xff]  ;;  %v45_v41 = vld [vmem:[#allocation2 + $0x28] sm:$0xff]  ;;  %s275_s1 = sshll.u32 %s367_s0, 4  ;;  %s276_s1 = int_to_ptr.vmem [resolvable:$true] %s275_s1 }
  0x1f   :  { %v63_v4 = vunpack.c.0.s8 %v62_v2  ;;  %v48_v36 = vld [vmem:[#allocation2 + $0x40] sm:$0xff]  ;;  %v46_v42 = vld [vmem:[#allocation2 + $0x30] sm:$0xff]  ;;  %v49_v48 = vld [vmem:[#allocation2 + $0x48] sm:$0xff]  ;;  %s336_s21 = scalar_lea.vmem %s276_s1, 2048  ;;  %p341_p11 = scmp.lt.s32.totalorder %s276_s1, %s276_s1 }
  0x20   :  { %v398_v8 = vsub.s32 0, %v65_v3  ;;  %v47_v50 = vld [vmem:[#allocation2 + $0x38] sm:$0xff]  ;;  %v50_v57 = vld [vmem:[#allocation2 + $0x50] sm:$0xff]  ;;  %v52_v2 = vld [vmem:[#allocation2 + $0x60] sm:$0xff]  ;;  %p337_p10 = scmp.ne.s32.totalorder %s276_s1, %s336_s21  ;;  %p342_p12 = scmp.lt.s32.totalorder %s336_s21, %s336_s21 }
  0x21   :  { %v395_v5 = vsub.s32 %v63_v4, %v65_v3  ;;  %v51_v61 = vld [vmem:[#allocation2 + $0x58] sm:$0xff] }
  0x22   :  { %p343_p13 = por %p342_p12, %p341_p11 }
  0x23   :  { %v67_v7 = vrot.slane %v56_v6, %v395_v5  ;;  %v74_v12 = vrot.slane %v60_v9, %v395_v5  ;;  %v116_v15 = vrot.slane %v57_v13, %v395_v5  ;;  %v123_v26 = vrot.slane %v109_v16, %v395_v5  ;;  %v55_v16 = vld [vmem:[#allocation2 + $0x78] sm:$0xff] }
  0x24   :  { %p344_p0 = pnand %p343_p13, %p337_p10 }
  0x25   :  { %v83_v10 = vrot.slane %v67_v7, %v395_v5  ;;  %v75_v11 = vcombine.high %v67_v7, %v67_v7  ;;  %v90_v20 = vrot.slane %v74_v12, %v395_v5  ;;  %v76_v23 = vcombine.high %v74_v12, %v74_v12 }
  0x26   :  { %v132_v24 = vrot.slane %v116_v15, %v395_v5  ;;  %v124_v25 = vcombine.high %v116_v15, %v116_v15  ;;  %v139_v62 = vrot.slane %v123_v26, %v395_v5  ;;  %v125_v63 = vcombine.high %v123_v26, %v123_v26 }
  0x27   :  { %v161_v17 = vrot.slane %v83_v10, %v398_v8  ;;  %v97_v18 = vrot.slane %v75_v11, %v395_v5  ;;  %v105_v19 = vcombine.high %v83_v10, %v83_v10  ;;  %v177_v33 = vrot.slane %v90_v20, %v398_v8  ;;  %v53_v10 = vld [vmem:[#allocation2 + $0x68] sm:$0xff]  ;;  %v54_v11 = vld [vmem:[#allocation2 + $0x70] sm:$0xff] }
  0x28   :  { %v104_v34 = vrot.slane %v76_v23, %v395_v5  ;;  %v106_v35 = vcombine.high %v90_v20, %v90_v20  ;;  %v193_v37 = vrot.slane %v132_v24, %v398_v8  ;;  %v146_v43 = vrot.slane %v124_v25, %v395_v5 }
  0x29   :  { %v238_v27 = vadd.f32 %v161_v17, %v40_v14  ;;  %v165_v28 = vrot.slane %v97_v18, %v398_v8  ;;  %v169_v29 = vrot.slane %v105_v19, %v398_v8  ;;  %v107_v30 = vcombine.high %v97_v18, %v97_v18 }
  0x2a   :  { %v242_v44 = vadd.f32 %v177_v33, %v44_v31  ;;  %v181_v45 = vrot.slane %v104_v34, %v398_v8  ;;  %v185_v46 = vrot.slane %v106_v35, %v398_v8  ;;  %v108_v47 = vcombine.high %v104_v34, %v104_v34 }
  0x2b   :  { %254 = vst [vmem:[#allocation7] sm:$0xff] %v238_v27  ;;  %v239_v38 = vadd.f32 %v165_v28, %v41_v21  ;;  %v240_v39 = vadd.f32 %v169_v29, %v42_v22  ;;  %v173_v40 = vrot.slane %v107_v30, %v398_v8  ;;  %v246_v51 = vadd.f32 %v193_v37, %v48_v36 }
  0x2c   :  { %v197_v52 = vrot.slane %v146_v43, %v398_v8  ;;  %v154_v53 = vcombine.high %v132_v24, %v132_v24  ;;  %258 = vst [vmem:[#allocation7 + $0x20] sm:$0xff] %v242_v44  ;;  %v243_v54 = vadd.f32 %v181_v45, %v45_v41  ;;  %v244_v55 = vadd.f32 %v185_v46, %v46_v42 }
  0x2d   :  { %255 = vst [vmem:[#allocation7 + $0x8] sm:$0xff] %v239_v38  ;;  %256 = vst [vmem:[#allocation7 + $0x10] sm:$0xff] %v240_v39  ;;  %v241_v49 = vadd.f32 %v173_v40, %v43_v32  ;;  %v189_v56 = vrot.slane %v108_v47, %v398_v8  ;;  %v156_v58 = vcombine.high %v146_v43, %v146_v43 }
  0x2e   :  { %262 = vst [vmem:[#allocation7 + $0x40] sm:$0xff] %v246_v51  ;;  %v247_v59 = vadd.f32 %v197_v52, %v49_v48  ;;  %v201_v60 = vrot.slane %v154_v53, %v398_v8  ;;  %259 = vst [vmem:[#allocation7 + $0x28] sm:$0xff] %v243_v54  ;;  %v209_v4 = vrot.slane %v139_v62, %v398_v8 }
  0x2f   :  { %257 = vst [vmem:[#allocation7 + $0x18] sm:$0xff] %v241_v49  ;;  %260 = vst [vmem:[#allocation7 + $0x30] sm:$0xff] %v244_v55  ;;  %v245_v0 = vadd.f32 %v189_v56, %v47_v50  ;;  %v205_v1 = vrot.slane %v156_v58, %v398_v8  ;;  %v153_v6 = vrot.slane %v125_v63, %v395_v5 }
  0x30   :  { %263 = vst [vmem:[#allocation7 + $0x48] sm:$0xff] %v247_v59  ;;  %v248_v3 = vadd.f32 %v201_v60, %v50_v57  ;;  %v155_v7 = vcombine.high %v139_v62, %v139_v62  ;;  %v250_v12 = vadd.f32 %v209_v4, %v52_v2 }
  0x31   :  { %261 = vst [vmem:[#allocation7 + $0x38] sm:$0xff] %v245_v0  ;;  %v249_v9 = vadd.f32 %v205_v1, %v51_v61  ;;  %v213_v13 = vrot.slane %v153_v6, %v398_v8  ;;  %v157_v15 = vcombine.high %v153_v6, %v153_v6 }
  0x32   :  { %264 = vst [vmem:[#allocation7 + $0x50] sm:$0xff] %v248_v3  ;;  %v217_v14 = vrot.slane %v155_v7, %v398_v8  ;;  %266 = vst [vmem:[#allocation7 + $0x60] sm:$0xff] %v250_v12 }
  0x33   :  { %265 = vst [vmem:[#allocation7 + $0x58] sm:$0xff] %v249_v9  ;;  %v251_v17 = vadd.f32 %v213_v13, %v53_v10  ;;  %v221_v5 = vrot.slane %v157_v15, %v398_v8 }
  0x34   :  { %v252_v18 = vadd.f32 %v217_v14, %v54_v11 }
  0x35   :  { %267 = vst [vmem:[#allocation7 + $0x68] sm:$0xff] %v251_v17  ;;  %v253_v19 = vadd.f32 %v221_v5, %v55_v16 }
  0x36   :  { %268 = vst [vmem:[#allocation7 + $0x70] sm:$0xff] %v252_v18 }
  0x37   :  { %269 = vst [vmem:[#allocation7 + $0x78] sm:$0xff] %v253_v19 }
  0x38   :  { %347 = shalt.err (!%p344_p0)
}
  0x39   :  { %281 = dma.vmem_to_hbm [thread:$0]  %s276_s1, 2048, %s435_s2, [#allocation4], %s363_s12, %s363_s12, %s364_s13  }
  0x3a   :  { %360 = dma.done.wait [#allocation4], 2048  }
  0x3b   :  { %361 = vsyncadd [#allocation4], 4294965248 }
  0x3c   :  { %285 = vsyncpa [#allocation3], 1 }
  0x3d   :  { %286 = vsyncpa [#allocation6], 1 }
  0x3e   :  { %287 = vsyncpa [#allocation4], 1 }

</bundles_post_ra>
